<compile_context>
chip_gen: v7x
topology: tpu7x:2x2x1
jax: 0.10.0
libtpu: 0.0.40
codegen_flags: <defaults>
</compile_context>

<pallas_src>
import math

import jax
import jax.numpy as jnp
from jax.experimental import pallas as pl
from jax.experimental.pallas import tpu as pltpu

IN_DIM = 10
PRE_WIDTH = 100
OUT_DIM = 10
HIDDEN_P = 128          # lane-padded hidden width (zero-padded, stays exactly 0)
MAX_TILE_B = 4096       # batch tile cap (multiple of 8); fits default scoped VMEM


def _gelu_exact(x):
    # PyTorch nn.GELU() default = exact erf-based GELU (kept in f32).
    return 0.5 * x * (1.0 + jax.lax.erf(x * 0.7071067811865476))


def _mlp_kernel(x_ref, w1_ref, b1_ref, w2_ref, b2_ref, w3_ref, b3_ref, o_ref):
    x = x_ref[...]                                                    # (tile_b, 10)
    h1 = jnp.dot(x, w1_ref[...], preferred_element_type=jnp.float32) + b1_ref[...]
    h1 = _gelu_exact(h1)                                              # (tile_b, 128); pad lanes stay 0
    h2 = jnp.dot(h1, w2_ref[...], preferred_element_type=jnp.float32) + b2_ref[...]
    h2 = _gelu_exact(h2)                                              # (tile_b, 128)
    out = jnp.dot(h2, w3_ref[...], preferred_element_type=jnp.float32) + b3_ref[...]
    o_ref[...] = out.astype(o_ref.dtype)                              # compact (tile_b, 10) store


def _round_up(n, m):
    return ((n + m - 1) // m) * m


def _pad_params(params):
    """Zero-pad hidden dims to 128 lanes. Output dim of w3 stays 10 (compact).

    Padded weight rows/cols and padded bias lanes are zero, and GELU(0) = 0,
    so the padded activation lanes stay exactly 0 end-to-end and the padded
    input rows of w3 contribute nothing to the output.
    """
    w1, b1 = params["w1"], params["b1"]   # (10,100), (1,100)
    w2, b2 = params["w2"], params["b2"]   # (100,100), (1,100)
    w3, b3 = params["w3"], params["b3"]   # (100,10),  (1,10)
    ph = HIDDEN_P - PRE_WIDTH             # 28
    w1p = jnp.pad(w1, ((0, 0), (0, ph)))                 # (10, 128)
    b1p = jnp.pad(b1, ((0, 0), (0, ph)))                 # (1, 128)
    w2p = jnp.pad(w2, ((0, ph), (0, ph)))                # (128, 128)
    b2p = jnp.pad(b2, ((0, 0), (0, ph)))                 # (1, 128)
    w3p = jnp.pad(w3, ((0, ph), (0, 0)))                 # (128, 10)
    b3p = b3                                              # (1, 10)
    return w1p, b1p, w2p, b2p, w3p, b3p


def base_model_forward(x, params):
    """Fused 3-layer MLP forward pass, batch-tiled Pallas kernel.

    x: (B, 10) float32
    params: dict of w1 (10,100), b1 (1,100), w2 (100,100), b2 (1,100),
            w3 (100,10), b3 (1,10)  -- weights stored as (in, out).
    Returns (B, 10) float32.
    """
    B = x.shape[0]
    # Keep >= 2 grid steps whenever B > 8 (v7x dual-TC), cap at MAX_TILE_B.
    half = -(-B // 2)                                     # cdiv(B, 2)
    tile_b = min(MAX_TILE_B, _round_up(max(half, 1), 8))
    grid_b = pl.cdiv(B, tile_b)                           # ragged last block handled by Pallas

    w1p, b1p, w2p, b2p, w3p, b3p = _pad_params(params)

    const2d = lambda a: pl.BlockSpec(a.shape, lambda i: (0, 0))  # grid-invariant, VMEM-resident

    out = pl.pallas_call(
        _mlp_kernel,
        out_shape=jax.ShapeDtypeStruct((B, OUT_DIM), jnp.float32),
        grid=(grid_b,),
        in_specs=[
            pl.BlockSpec((tile_b, IN_DIM), lambda i: (i, 0)),
            const2d(w1p), const2d(b1p),
            const2d(w2p), const2d(b2p),
            const2d(w3p), const2d(b3p),
        ],
        out_specs=pl.BlockSpec((tile_b, OUT_DIM), lambda i: (i, 0)),
        compiler_params=pltpu.CompilerParams(
            dimension_semantics=("parallel",)),
    )(x, w1p, b1p, w2p, b2p, w3p, b3p)

    return out


def init_params(key, gain=1.0):
    """Deterministic meta_init: xavier_uniform(gain) weights, bias = 0.01."""
    def xavier(k, fan_in, fan_out):
        a = gain * math.sqrt(6.0 / (fan_in + fan_out))
        # stored transposed relative to torch (out,in) -> (in,out); bound is symmetric
        return jax.random.uniform(k, (fan_in, fan_out), jnp.float32, -a, a)

    k1, k2, k3 = jax.random.split(key, 3)
    return {
        "w1": xavier(k1, IN_DIM, PRE_WIDTH),
        "b1": jnp.full((1, PRE_WIDTH), 0.01, jnp.float32),
        "w2": xavier(k2, PRE_WIDTH, PRE_WIDTH),
        "b2": jnp.full((1, PRE_WIDTH), 0.01, jnp.float32),
        "w3": xavier(k3, PRE_WIDTH, OUT_DIM),
        "b3": jnp.full((1, OUT_DIM), 0.01, jnp.float32),
    }


def _reference_forward(x, p):
    h1 = _gelu_exact(x @ p["w1"] + p["b1"])
    h2 = _gelu_exact(h1 @ p["w2"] + p["b2"])
    return h2 @ p["w3"] + p["b3"]


if __name__ == "__main__":
    key = jax.random.PRNGKey(0)
    k_params, k_x, k_x2 = jax.random.split(key, 3)

    params = init_params(k_params, gain=1.0)

    # Small primary example: batch=8, features=10.
    x = jax.random.normal(k_x, (8, IN_DIM), jnp.float32)
    out = jax.block_until_ready(base_model_forward(x, params))
    ref = _reference_forward(x, params)
    assert out.shape == (8, OUT_DIM)
    assert jnp.allclose(out, ref, atol=1e-4, rtol=1e-4), "mismatch vs JAX reference (B=8)"

    # Uneven batch to exercise the ragged last block / multi-step parallel grid.
    x2 = jax.random.normal(k_x2, (37, IN_DIM), jnp.float32)
    out2 = jax.block_until_ready(base_model_forward(x2, params))
    ref2 = _reference_forward(x2, params)
    assert out2.shape == (37, OUT_DIM)
    assert jnp.allclose(out2, ref2, atol=1e-4, rtol=1e-4), "mismatch vs JAX reference (B=37)"

    print("KERNEL_OK")
</pallas_src>

<mosaic_0001>
module attributes {stable_mosaic.version = 11 : i64} {
  func.func @_mlp_kernel(%arg0: i32, %arg1: memref<8x10xf32, #tpu.memory_space<vmem>>, %arg2: memref<10x128xf32, #tpu.memory_space<vmem>>, %arg3: memref<1x128xf32, #tpu.memory_space<vmem>>, %arg4: memref<128x128xf32, #tpu.memory_space<vmem>>, %arg5: memref<1x128xf32, #tpu.memory_space<vmem>>, %arg6: memref<128x10xf32, #tpu.memory_space<vmem>>, %arg7: memref<1x10xf32, #tpu.memory_space<vmem>>, %arg8: memref<8x10xf32, #tpu.memory_space<vmem>>) attributes {dimension_semantics = [#tpu.dimension_semantics<parallel>], iteration_bounds = array<i64: 1>, scalar_prefetch = 0 : i64, scratch_operands = 0 : i64, tpu.core_type = #tpu.core_type<tc>, window_params = [{transform_indices = @transform_0, window_bounds = array<i64: 8, 10>}, {pipeline_mode = #tpu.pipeline_mode<synchronous>, transform_indices = @transform_1, window_bounds = array<i64: 10, 128>}, {pipeline_mode = #tpu.pipeline_mode<synchronous>, transform_indices = @transform_2, window_bounds = array<i64: 1, 128>}, {pipeline_mode = #tpu.pipeline_mode<synchronous>, transform_indices = @transform_3, window_bounds = array<i64: 128, 128>}, {pipeline_mode = #tpu.pipeline_mode<synchronous>, transform_indices = @transform_4, window_bounds = array<i64: 1, 128>}, {pipeline_mode = #tpu.pipeline_mode<synchronous>, transform_indices = @transform_5, window_bounds = array<i64: 128, 10>}, {pipeline_mode = #tpu.pipeline_mode<synchronous>, transform_indices = @transform_6, window_bounds = array<i64: 1, 10>}, {transform_indices = @transform_7, window_bounds = array<i64: 8, 10>}]} {
    %c0 = arith.constant 0 : index
    %c0_0 = arith.constant 0 : index
    %0 = vector.load %arg1[%c0, %c0_0] : memref<8x10xf32, #tpu.memory_space<vmem>>, vector<8x10xf32>
    %c0_1 = arith.constant 0 : index
    %c0_2 = arith.constant 0 : index
    %1 = vector.load %arg2[%c0_1, %c0_2] : memref<10x128xf32, #tpu.memory_space<vmem>>, vector<10x128xf32>
    %cst = arith.constant dense<0.000000e+00> : vector<8x128xf32>
    %2 = tpu.matmul %0, %1, %cst {dimension_numbers = #tpu.dot_dimension_numbers<[1], [0], [0], [1], [0, 0, 1, 1], [], []>} : vector<8x10xf32>, vector<10x128xf32>, vector<8x128xf32> -> vector<8x128xf32>
    %c0_3 = arith.constant 0 : index
    %c0_4 = arith.constant 0 : index
    %3 = vector.load %arg3[%c0_3, %c0_4] : memref<1x128xf32, #tpu.memory_space<vmem>>, vector<1x128xf32>
    %4 = vector.broadcast %3 : vector<1x128xf32> to vector<8x128xf32>
    %5 = arith.addf %2, %4 : vector<8x128xf32>
    %cst_5 = arith.constant 5.000000e-01 : f32
    %6 = vector.broadcast %cst_5 : f32 to vector<8x128xf32>
    %7 = arith.mulf %6, %5 : vector<8x128xf32>
    %cst_6 = arith.constant 0.707106769 : f32
    %8 = vector.broadcast %cst_6 : f32 to vector<8x128xf32>
    %9 = arith.mulf %5, %8 : vector<8x128xf32>
    %10 = math.erf %9 : vector<8x128xf32>
    %cst_7 = arith.constant 1.000000e+00 : f32
    %11 = vector.broadcast %cst_7 : f32 to vector<8x128xf32>
    %12 = arith.addf %11, %10 : vector<8x128xf32>
    %13 = arith.mulf %7, %12 : vector<8x128xf32>
    %c0_8 = arith.constant 0 : index
    %c0_9 = arith.constant 0 : index
    %14 = vector.load %arg4[%c0_8, %c0_9] : memref<128x128xf32, #tpu.memory_space<vmem>>, vector<128x128xf32>
    %cst_10 = arith.constant dense<0.000000e+00> : vector<8x128xf32>
    %15 = tpu.matmul %13, %14, %cst_10 {dimension_numbers = #tpu.dot_dimension_numbers<[1], [0], [0], [1], [0, 0, 1, 1], [], []>} : vector<8x128xf32>, vector<128x128xf32>, vector<8x128xf32> -> vector<8x128xf32>
    %c0_11 = arith.constant 0 : index
    %c0_12 = arith.constant 0 : index
    %16 = vector.load %arg5[%c0_11, %c0_12] : memref<1x128xf32, #tpu.memory_space<vmem>>, vector<1x128xf32>
    %17 = vector.broadcast %16 : vector<1x128xf32> to vector<8x128xf32>
    %18 = arith.addf %15, %17 : vector<8x128xf32>
    %cst_13 = arith.constant 5.000000e-01 : f32
    %19 = vector.broadcast %cst_13 : f32 to vector<8x128xf32>
    %20 = arith.mulf %19, %18 : vector<8x128xf32>
    %cst_14 = arith.constant 0.707106769 : f32
    %21 = vector.broadcast %cst_14 : f32 to vector<8x128xf32>
    %22 = arith.mulf %18, %21 : vector<8x128xf32>
    %23 = math.erf %22 : vector<8x128xf32>
    %cst_15 = arith.constant 1.000000e+00 : f32
    %24 = vector.broadcast %cst_15 : f32 to vector<8x128xf32>
    %25 = arith.addf %24, %23 : vector<8x128xf32>
    %26 = arith.mulf %20, %25 : vector<8x128xf32>
    %c0_16 = arith.constant 0 : index
    %c0_17 = arith.constant 0 : index
    %27 = vector.load %arg6[%c0_16, %c0_17] : memref<128x10xf32, #tpu.memory_space<vmem>>, vector<128x10xf32>
    %cst_18 = arith.constant dense<0.000000e+00> : vector<8x10xf32>
    %28 = tpu.matmul %26, %27, %cst_18 {dimension_numbers = #tpu.dot_dimension_numbers<[1], [0], [0], [1], [0, 0, 1, 1], [], []>} : vector<8x128xf32>, vector<128x10xf32>, vector<8x10xf32> -> vector<8x10xf32>
    %c0_19 = arith.constant 0 : index
    %c0_20 = arith.constant 0 : index
    %29 = vector.load %arg7[%c0_19, %c0_20] : memref<1x10xf32, #tpu.memory_space<vmem>>, vector<1x10xf32>
    %30 = vector.broadcast %29 : vector<1x10xf32> to vector<8x10xf32>
    %31 = arith.addf %28, %30 : vector<8x10xf32>
    %c0_21 = arith.constant 0 : index
    %c0_22 = arith.constant 0 : index
    %32 = vector.load %arg8[%c0_21, %c0_22] : memref<8x10xf32, #tpu.memory_space<vmem>>, vector<8x10xf32>
    tpu.vector_store %arg8[%c0_21, %c0_22], %31 {strides = array<i32>} : memref<8x10xf32, #tpu.memory_space<vmem>>, vector<8x10xf32>,
    return
  }
  func.func @transform_0(%arg0: i32) -> (i32, i32) {
    %c0_i32 = arith.constant 0 : i32
    %c0_i32_0 = arith.constant 0 : i32
    return %arg0, %c0_i32 : i32, i32
  }
  func.func @transform_1(%arg0: i32) -> (i32, i32) {
    %c0_i32 = arith.constant 0 : i32
    %c0_i32_0 = arith.constant 0 : i32
    %c0_i32_1 = arith.constant 0 : i32
    return %c0_i32, %c0_i32_0 : i32, i32
  }
  func.func @transform_2(%arg0: i32) -> (i32, i32) {
    %c0_i32 = arith.constant 0 : i32
    %c0_i32_0 = arith.constant 0 : i32
    %c0_i32_1 = arith.constant 0 : i32
    return %c0_i32, %c0_i32_0 : i32, i32
  }
  func.func @transform_3(%arg0: i32) -> (i32, i32) {
    %c0_i32 = arith.constant 0 : i32
    %c0_i32_0 = arith.constant 0 : i32
    %c0_i32_1 = arith.constant 0 : i32
    return %c0_i32, %c0_i32_0 : i32, i32
  }
  func.func @transform_4(%arg0: i32) -> (i32, i32) {
    %c0_i32 = arith.constant 0 : i32
    %c0_i32_0 = arith.constant 0 : i32
    %c0_i32_1 = arith.constant 0 : i32
    return %c0_i32, %c0_i32_0 : i32, i32
  }
  func.func @transform_5(%arg0: i32) -> (i32, i32) {
    %c0_i32 = arith.constant 0 : i32
    %c0_i32_0 = arith.constant 0 : i32
    %c0_i32_1 = arith.constant 0 : i32
    return %c0_i32, %c0_i32_0 : i32, i32
  }
  func.func @transform_6(%arg0: i32) -> (i32, i32) {
    %c0_i32 = arith.constant 0 : i32
    %c0_i32_0 = arith.constant 0 : i32
    %c0_i32_1 = arith.constant 0 : i32
    return %c0_i32, %c0_i32_0 : i32, i32
  }
  func.func @transform_7(%arg0: i32) -> (i32, i32) {
    %c0_i32 = arith.constant 0 : i32
    %c0_i32_0 = arith.constant 0 : i32
    return %arg0, %c0_i32 : i32, i32
  }
}

</mosaic_0001>

<bundles_post_ra>
// kernel: tpu_custom_call.1
= control target key start
LH: loop header
LB: loop body
LE: loop exit
PB: predicated region body
PF: predicated region fallthrough
CT: control target
= control target key end

     0   :  { %12 = vsyncpa [#allocation3], 0  ;;  %s771_s0 = inlined_call_operand.hbm [shape: f32[8,10], index: 0, kind: input, shape index: {}]   ;;  %s772_s1 = inlined_call_operand.vmem [shape: f32[10,128], index: 1, kind: input, shape index: {}]   ;;  %s773_s2 = inlined_call_operand.vmem [shape: f32[1,128], index: 2, kind: input, shape index: {}]   ;;  %s774_s3 = inlined_call_operand.vmem [shape: f32[128,128], index: 3, kind: input, shape index: {}]   ;;  %s775_s4 = inlined_call_operand.vmem [shape: f32[1,128], index: 4, kind: input, shape index: {}]   ;;  %s776_s5 = inlined_call_operand.vmem [shape: f32[128,10], index: 5, kind: input, shape index: {}]   ;;  %s777_s6 = inlined_call_operand.vmem [shape: f32[1,10], index: 6, kind: input, shape index: {}]   ;;  %s778_s7 = inlined_call_operand.hbm [shape: f32[8,10], index: 7, kind: output, shape index: {}]  }
   0x1   :  { %13 = vsyncpa [#allocation4], 0  ;;  %s568_s24 = smov [#allocation2]   ;;  %s520_s28 = scalar_lea.hbm %s771_s0, 128 }
   0x2   :  { %s20_s25 = sshll.u32 %s568_s24, 4  ;;  %p521_p0 = scmp.ne.s32.totalorder %s771_s0, %s520_s28  ;;  %s21_s25 = int_to_ptr.vmem [resolvable:$true] %s20_s25 }
   0x3   :  { %p524_p1 = scmp.lt.u32.totalorder %s520_s28, %s771_s0 }
   0x5   :  { %p526_p2 = pnand %p524_p1, %p521_p0 }
   0x7   :  { %529 = shalt.err (!%p526_p2)
}
   0x8   :  { %s530_s10 = scalar_lea.vmem %s21_s25, 128  ;;  %p535_p4 = scmp.lt.s32.totalorder %s21_s25, %s21_s25 }
   0x9   :  { %p531_p3 = scmp.ne.s32.totalorder %s21_s25, %s530_s10  ;;  %p536_p5 = scmp.lt.s32.totalorder %s530_s10, %s530_s10 }
   0xb   :  { %p537_p6 = por %p536_p5, %p535_p4 }
   0xd   :  { %p538_p7 = pnand %p537_p6, %p531_p3 }
   0xf   :  { %541 = shalt.err (!%p538_p7)
}
  0x10   :  { %23 = dma.hbm_to_vmem [thread:$0]  %s771_s0, 128, %s21_s25, [#allocation3]  }
  0x11   :  { %564 = dma.done.wait [#allocation3], 128  }
  0x12   :  { %565 = vsyncadd [#allocation3], 4294967168  ;;  %v569_v0 = vmov 0.0|0.0   ;;  %vm570_vm0 = vmmov 0   ;;  %v571_v1 = vmov 0.0   ;;  %vm53_vm1 = vcmask 1041408  }
  0x13   :  { %458 = vmatprep.subr.bf16.mxu0 %v569_v0  ;;  %462 = vmatprep.subr.bf16.mxu1 %v569_v0  ;;  %v40_v2 = vld [vmem:[%s772_s1] sm:$0xff]  ;;  %v41_v3 = vld [vmem:[%s772_s1 + $0x8] sm:$0x3]  ;;  %vm572_vm2 = vmmov 1   ;;  %v134_v7 = vld [vmem:[%s774_s3 + $0x10] sm:$0xff]  ;;  %vm49_vm4 = vcmask 80896  }
  0x14   :  { %385 = vmatprep.mubr.msk.f32.mxu0 %vm570_vm0, %v571_v1  ;;  %420 = vmatprep.mubr.msk.f32.mxu1 %vm570_vm0, %v571_v1  ;;  %vm460_vm3 = vmpackc.low %vm53_vm1, %vm572_vm2  ;;  %v459_v4 = vpack.c.bf16 %v41_v3, %v40_v2  ;;  %v132_v5 = vld [vmem:[%s774_s3] sm:$0xff]  ;;  %v133_v6 = vld [vmem:[%s774_s3 + $0x8] sm:$0xff] }
  0x15   :  { %v463_v8 = vpack.c.bf16 %v133_v6, %v132_v5  ;;  %v135_v9 = vld [vmem:[%s774_s3 + $0x18] sm:$0xff]  ;;  %v39_v10 = vld [vmem:[#allocation2] sm:$0xff]  ;;  %v137_v13 = vld [vmem:[%s774_s3 + $0x28] sm:$0xff] }
  0x16   :  { %461 = vmatpush3.bf16.msk.msra.mxu0 %vm460_vm3, %v459_v4  ;;  %v466_v11 = vpack.c.bf16 %v135_v9, %v134_v7  ;;  %v136_v12 = vld [vmem:[%s774_s3 + $0x20] sm:$0xff]  ;;  %v138_v15 = vld [vmem:[%s774_s3 + $0x30] sm:$0xff]  ;;  %v139_v16 = vld [vmem:[%s774_s3 + $0x38] sm:$0xff] }
  0x17   :  { %464 = vmatpush3.bf16.msra.mxu1 %v463_v8  ;;  %486 = vmatprep.subr.bf16.mxu0 %v569_v0  ;;  %v469_v14 = vpack.c.bf16 %v137_v13, %v136_v12  ;;  %v472_v17 = vpack.c.bf16 %v139_v16, %v138_v15  ;;  %v140_v18 = vld [vmem:[%s774_s3 + $0x40] sm:$0xff]  ;;  %v141_v19 = vld [vmem:[%s774_s3 + $0x48] sm:$0xff]  ;;  %v142_v21 = vld [vmem:[%s774_s3 + $0x50] sm:$0xff] }
  0x18   :  { %465 = vmatprep.subr.bf16.mxu1 %v569_v0  ;;  %v475_v20 = vpack.c.bf16 %v141_v19, %v140_v18  ;;  %v143_v22 = vld [vmem:[%s774_s3 + $0x58] sm:$0xff]  ;;  %v144_v24 = vld [vmem:[%s774_s3 + $0x60] sm:$0xff]  ;;  %v145_v25 = vld [vmem:[%s774_s3 + $0x68] sm:$0xff] }
  0x19   :  { %386 = vmatmul.mubr.msk.f32.vlgmr.msra.gmra.mrb[0].mxu0 %vm49_vm4, %v39_v10  ;;  %v478_v23 = vpack.c.bf16 %v143_v22, %v142_v21  ;;  %v481_v26 = vpack.c.bf16 %v145_v25, %v144_v24  ;;  %v146_v27 = vld [vmem:[%s774_s3 + $0x70] sm:$0xff]  ;;  %v147_v28 = vld [vmem:[%s774_s3 + $0x78] sm:$0xff]  ;;  %v230_v30 = vld [vmem:[%s776_s5] sm:$0xff] }
  0x1a   :  { %455 = vmatprep.mubr.msk.f32.mxu0 %vm570_vm0, %v571_v1  ;;  %v484_v29 = vpack.c.bf16 %v147_v28, %v146_v27  ;;  %v231_v31 = vld [vmem:[%s776_s5 + $0x8] sm:$0xff]  ;;  %v232_v32 = vld [vmem:[%s776_s5 + $0x10] sm:$0xff]  ;;  %v233_v34 = vld [vmem:[%s776_s5 + $0x18] sm:$0xff] }
  0x1b   :  { %467 = vmatpush3.bf16.msra.mxu1 %v466_v11  ;;  %v487_v33 = vpack.c.bf16 %v231_v31, %v230_v30  ;;  %v490_v35 = vpack.c.bf16 %v233_v34, %v232_v32  ;;  %v234_v36 = vld [vmem:[%s776_s5 + $0x20] sm:$0xff]  ;;  %v235_v37 = vld [vmem:[%s776_s5 + $0x28] sm:$0xff]  ;;  %v236_v48 = vld [vmem:[%s776_s5 + $0x30] sm:$0xff] }
  0x1c   :  { %468 = vmatprep.subr.bf16.mxu1 %v569_v0  ;;  %v493_v38 = vpack.c.bf16 %v235_v37, %v234_v36  ;;  %v339_v39 = vld [vmem:[%s773_s2] ss:$0 sm:$0xff]  ;;  %v237_v49 = vld [vmem:[%s776_s5 + $0x38] sm:$0xff]  ;;  %v239_v52 = vld [vmem:[%s776_s5 + $0x48] sm:$0xff] }
  0x1d   :  { %488 = vmatpush3.bf16.msra.mxu0 %v487_v33  ;;  %v496_v50 = vpack.c.bf16 %v237_v49, %v236_v48  ;;  %v238_v51 = vld [vmem:[%s776_s5 + $0x40] sm:$0xff]  ;;  %v240_v54 = vld [vmem:[%s776_s5 + $0x50] sm:$0xff]  ;;  %v241_v55 = vld [vmem:[%s776_s5 + $0x58] sm:$0xff] }
  0x1e   :  { %489 = vmatprep.subr.bf16.mxu0 %v569_v0  ;;  %v499_v53 = vpack.c.bf16 %v239_v52, %v238_v51  ;;  %v502_v56 = vpack.c.bf16 %v241_v55, %v240_v54  ;;  %v242_v57 = vld [vmem:[%s776_s5 + $0x60] sm:$0xff]  ;;  %v243_v58 = vld [vmem:[%s776_s5 + $0x68] sm:$0xff]  ;;  %v244_v60 = vld [vmem:[%s776_s5 + $0x70] sm:$0xff] }
  0x1f   :  { %470 = vmatpush3.bf16.msra.mxu1 %v469_v14  ;;  %v505_v59 = vpack.c.bf16 %v243_v58, %v242_v57  ;;  %v245_v61 = vld [vmem:[%s776_s5 + $0x78] sm:$0xff]  ;;  %v342_v63 = vld [vmem:[%s775_s4] ss:$0 sm:$0xff]  ;;  %s573_s5 = smov [#allocation5]  }
  0x20   :  { %471 = vmatprep.subr.bf16.mxu1 %v569_v0  ;;  %v508_v62 = vpack.c.bf16 %v245_v61, %v244_v60  ;;  %v343_v8 = vld [vmem:[%s777_s6] ss:$0 sm:$0xff]  ;;  %s330_s9 = sshll.u32 %s573_s5, 4  ;;  %s331_s9 = int_to_ptr.vmem [resolvable:$true] %s330_s9 }
  0x21   :  { %491 = vmatpush3.bf16.msra.mxu0 %v490_v35  ;;  %s542_s4 = scalar_lea.vmem %s331_s9, 128  ;;  %p547_p9 = scmp.lt.s32.totalorder %s331_s9, %s331_s9 }
  0x22   :  { %492 = vmatprep.subr.bf16.mxu0 %v569_v0  ;;  %p543_p8 = scmp.ne.s32.totalorder %s331_s9, %s542_s4  ;;  %p548_p10 = scmp.lt.s32.totalorder %s542_s4, %s542_s4 }
  0x23   :  { %473 = vmatpush3.bf16.msra.mxu1 %v472_v17 }
  0x24   :  { %474 = vmatprep.subr.bf16.mxu1 %v569_v0  ;;  %p549_p11 = por %p548_p10, %p547_p9 }
  0x25   :  { %494 = vmatpush3.bf16.msra.mxu0 %v493_v38 }
  0x26   :  { %495 = vmatprep.subr.bf16.mxu0 %v569_v0  ;;  %p550_p12 = pnand %p549_p11, %p543_p8 }
  0x27   :  { %476 = vmatpush3.bf16.msra.mxu1 %v475_v20 }
  0x28   :  { %477 = vmatprep.subr.bf16.mxu1 %v569_v0 }
  0x29   :  { %497 = vmatpush3.bf16.msra.mxu0 %v496_v50 }
  0x2a   :  { %498 = vmatprep.subr.bf16.mxu0 %v569_v0 }
  0x2b   :  { %479 = vmatpush3.bf16.msra.mxu1 %v478_v23 }
  0x2c   :  { %480 = vmatprep.subr.bf16.mxu1 %v569_v0 }
  0x2d   :  { %500 = vmatpush3.bf16.msra.mxu0 %v499_v53 }
  0x2e   :  { %501 = vmatprep.subr.bf16.mxu0 %v569_v0 }
  0x2f   :  { %482 = vmatpush3.bf16.msra.mxu1 %v481_v26 }
  0x30   :  { %483 = vmatprep.subr.bf16.mxu1 %v569_v0 }
  0x31   :  { %503 = vmatpush3.bf16.msra.mxu0 %v502_v56 }
  0x32   :  { %504 = vmatprep.subr.bf16.mxu0 %v569_v0 }
  0x33   :  { %485 = vmatpush3.bf16.msra.mxu1 %v484_v29 }
  0x35   :  { %506 = vmatpush3.bf16.msra.mxu0 %v505_v59 }
  0x36   :  { %507 = vmatprep.subr.bf16.mxu0 %v569_v0 }
  0x39   :  { %509 = vmatpush3.bf16.msra.mxu0 %v508_v62 }
  0xec   :  { %v123_v40 = vpop.f32.mrb[0].mxu0 }
  0xed   :  { %v124_v41 = vadd.f32 %v339_v39, %v123_v40  ;;  %v387_v42 = vpop.f32.mrb[1].mxu0 }
  0xef   :  { %v128_v43 = vmul.f32 0.70710677, %v124_v41  ;;  %v127_v45 = vmul.f32 0.5, %v124_v41 }
  0xf1   :  { %516 = verf.f32 %v128_v43 }
  0xfb   :  { %v517_v44 = vpop.eup %516 }
  0xfc   :  { %v130_v46 = vadd.f32 1.0, %v517_v44 }
  0xfe   :  { %v131_v47 = vmul.f32 %v130_v46, %v127_v45 }
 0x100   :  { %421 = vmatmul.mubr.f32.vlgmr.msra.gmra.mrb[0].mxu1 %v131_v47 }
 0x1d3   :  { %v221_v1 = vpop.f32.mrb[0].mxu1 }
 0x1d4   :  { %v222_v2 = vadd.f32 %v342_v63, %v221_v1  ;;  %v422_v3 = vpop.f32.mrb[1].mxu1 }
 0x1d6   :  { %v226_v4 = vmul.f32 0.70710677, %v222_v2  ;;  %v225_v5 = vmul.f32 0.5, %v222_v2 }
 0x1d8   :  { %518 = verf.f32 %v226_v4 }
 0x1e2   :  { %v519_v0 = vpop.eup %518 }
 0x1e3   :  { %v228_v6 = vadd.f32 1.0, %v519_v0 }
 0x1e5   :  { %v229_v7 = vmul.f32 %v228_v6, %v225_v5 }
 0x1e7   :  { %456 = vmatmul.mubr.f32.vlgmr.msra.gmra.mrb[2].mxu0 %v229_v7 }
 0x2ba   :  { %v319_v9 = vpop.f32.mrb[2].mxu0 }
 0x2bb   :  { %v320_v10 = vadd.f32 %v343_v8, %v319_v9  ;;  %v457_v11 = vpop.f32.mrb[3].mxu0 }
 0x2bd   :  { %323 = vst.msk [vmem:[#allocation5] sm:$0xff] %vm49_vm4, %v320_v10 }
 0x2be   :  { %553 = shalt.err (!%p550_p12)
}
 0x2bf   :  { %s554_s12 = scalar_lea.hbm %s778_s7, 128 }
 0x2c0   :  { %p555_p13 = scmp.ne.s32.totalorder %s778_s7, %s554_s12  ;;  %p558_p0 = scmp.lt.u32.totalorder %s554_s12, %s778_s7 }
 0x2c2   :  { %p560_p1 = pnand %p558_p0, %p555_p13 }
 0x2c4   :  { %563 = shalt.err (!%p560_p1)
}
 0x2c5   :  { %333 = dma.vmem_to_hbm [thread:$0]  %s331_s9, 128, %s778_s7, [#allocation4]  }
 0x2c6   :  { %566 = dma.done.wait [#allocation4], 128  }
 0x2c7   :  { %567 = vsyncadd [#allocation4], 4294967168 }
 0x2c8   :  { %337 = vsyncpa [#allocation3], 1 }
 0x2c9   :  { %338 = vsyncpa [#allocation4], 1 }

</bundles_post_ra>
